<compile_context>
chip_gen: v7x
topology: tpu7x:2x2x1
jax: 0.10.0
libtpu: 0.0.40
codegen_flags: <defaults>
</compile_context>

<pallas_src>
import functools

import jax
import jax.numpy as jnp
from jax.experimental import pallas as pl
from jax.experimental.pallas import tpu as pltpu

EPS = 1e-5
NEG_SLOPE = 0.2


def _tconv_in_lrelu_kernel(x_ref, w_ref, o_ref, *, pack_pairs: bool):
    """One (batch element, channel tile) grid step.

    x_ref: (Cin, HW)        f32 input tile (one batch element, spatial flattened)
    w_ref: (4*c_tile, Cin)  compute-dtype weights, rows tap-major:
                            row = k*c_tile + c_local, tap k = kh*2 + kw
    o_ref: pack_pairs=True  -> (2, c_tile, HW) uint32  (bf16 (kw=0,kw=1) pairs per lane)
           pack_pairs=False -> (4, c_tile, HW) float32
    """
    cdt = w_ref.dtype
    c_tile = w_ref.shape[0] // 4
    hw = x_ref.shape[1]

    # Cast x to the MXU dtype here (x is fed as f32 straight from HBM).
    x = x_ref[...].astype(cdt)
    w = w_ref[...]

    # All four transpose-conv taps of this channel tile in a single MXU matmul,
    # HW on the lane axis (lane-dense stores regardless of Cout).
    y = jnp.dot(w, x, preferred_element_type=jnp.float32)          # (4*c_tile, HW)
    y = y.reshape(4, c_tile, hw)                                   # pure sublane regroup

    # Per-channel sums via the row-sum identity (saves one full pass over y and keeps
    # the MXU-consistent values: x already cast to the compute dtype).
    xs = jnp.sum(x.astype(jnp.float32), axis=1, keepdims=True)     # (Cin, 1)
    row_sums = jnp.sum(w.astype(jnp.float32) * xs.reshape(1, -1),
                       axis=1, keepdims=True)                      # (4*c_tile, 1)
    inv_n = 1.0 / (4.0 * hw)
    mean = jnp.sum(row_sums.reshape(4, c_tile, 1),
                   axis=0, keepdims=True) * inv_n                  # (1, c_tile, 1)

    # Centered (two-pass) variance: no catastrophic E[y^2]-E[y]^2 cancellation.
    d = y - mean
    ss = jnp.sum(d * d, axis=2, keepdims=True)                     # (4, c_tile, 1)
    ss = jnp.sum(ss, axis=0, keepdims=True)                        # (1, c_tile, 1)
    scale = jax.lax.rsqrt(ss * inv_n + EPS)

    # Fused normalize + LeakyReLU(0.2).
    z = d * scale
    act = jnp.where(z >= 0.0, z, NEG_SLOPE * z)                    # (4, c_tile, HW) f32

    if pack_pairs:
        # In-kernel kw-interleave: pack the (kw=0, kw=1) bf16 tap pair of each output
        # pixel into one u32 lane (kw=0 -> low 16 bits, kw=1 -> high 16 bits).
        # bf16 bits == top 16 bits of the f32 pattern, so no 16-bit integer ops needed.
        def pack(kw0_f32, kw1_f32):
            b0 = pltpu.bitcast(kw0_f32.astype(jnp.bfloat16).astype(jnp.float32),
                               jnp.uint32)
            b1 = pltpu.bitcast(kw1_f32.astype(jnp.bfloat16).astype(jnp.float32),
                               jnp.uint32)
            return (b0 >> 16) | b1        # low 16 = kw0 bits, high 16 = kw1 bits

        o_ref[0] = pack(act[0], act[1])   # kh = 0  (taps (0,0), (0,1))
        o_ref[1] = pack(act[2], act[3])   # kh = 1  (taps (1,0), (1,1))
    else:
        o_ref[...] = act.astype(o_ref.dtype)


def _vmem_estimate(c_tile, cin, hw, w_item, o_item_per_tap, x_item=4):
    x_blk = cin * hw * x_item                    # f32 input tile
    w_blk = 4 * c_tile * cin * w_item
    o_blk = 4 * c_tile * hw * o_item_per_tap     # packed: 2 B / tap value, f32: 4 B
    temps = 3 * (4 * c_tile * hw * 4)            # y / centered / activated f32 temps
    return 2 * (x_blk + w_blk + o_blk) + temps   # double-buffered blocks + temps


def _pick_c_tile(cout_p, cin, hw, n_batch, w_item, o_item_per_tap):
    # Divisors of the (8-padded) Cout that are multiples of 8, largest first.
    cands = [d for d in range(cout_p, 7, -1) if cout_p % d == 0 and d % 8 == 0]
    if not cands:
        cands = [cout_p]
    # v7x megacore: with a single image make sure the grid has >= 2 parallel steps.
    if n_batch == 1 and len(cands) > 1 and cands[0] == cout_p:
        cands = cands[1:] + cands[:1]
    # Largest candidate that keeps the per-step footprint well inside every
    # generation's scoped VMEM (shrink the tile instead of raising the limit).
    target = 24 * 1024 * 1024
    for ct in cands:
        if _vmem_estimate(ct, cin, hw, w_item, o_item_per_tap) <= target:
            return ct
    return cands[-1]


def transpose_conv_block(x_nchw: jax.Array, weight: jax.Array, *,
                         compute_dtype=jnp.bfloat16, c_tile=None,
                         out_dtype=None) -> jax.Array:
    """ConvTranspose2d(k=2, s=2, bias=False) -> InstanceNorm2d -> LeakyReLU(0.2).

    Args:
      x_nchw: (N, Cin, H, W) float32
      weight: (Cin, Cout, 2, 2) float32 (PyTorch ConvTranspose2d layout)
      compute_dtype: matmul operand dtype (f32 accumulation). bfloat16 (default) also
        enables the packed bf16 output path; float32 keeps an unpacked f32 output.
      c_tile: output channels per grid step (must divide padded Cout); auto if None.
      out_dtype: final dtype (defaults to x's dtype; cast happens only at the very end).
    Returns:
      (N, Cout, 2H, 2W) array.
    """
    N, Cin, H, W = x_nchw.shape
    assert weight.shape[0] == Cin and weight.shape[2:] == (2, 2)
    Cout = weight.shape[1]
    HW = H * W
    if out_dtype is None:
        out_dtype = x_nchw.dtype

    pack_pairs = jnp.dtype(compute_dtype) == jnp.dtype(jnp.bfloat16)
    w_item = jnp.dtype(compute_dtype).itemsize
    o_item = 2 if pack_pairs else 4

    # Pad Cout to a multiple of 8 so channel tiles are sublane-aligned (padded
    # channels are all-zero and get sliced off at the end).
    cout_p = ((Cout + 7) // 8) * 8
    weight_p = weight if cout_p == Cout else jnp.pad(
        weight, ((0, 0), (0, cout_p - Cout), (0, 0), (0, 0)))

    if c_tile is None:
        c_tile = _pick_c_tile(cout_p, Cin, HW, N, w_item, o_item)
    assert cout_p % c_tile == 0
    num_ct = cout_p // c_tile

    # Input glue: NCHW -> (N, Cin, H*W) is a contiguous reshape; x stays f32 in HBM.
    x_in = x_nchw.reshape(N, Cin, HW)

    # Weight glue: (Cin, Cout, 2, 2) -> (num_ct, 4*c_tile, Cin), rows tap-major per
    # tile: row = k*c_tile + c_local, tap k = kh*2 + kw.
    w4 = jnp.transpose(weight_p, (2, 3, 1, 0)).reshape(4, cout_p, Cin)
    w4 = w4.reshape(4, num_ct, c_tile, Cin)
    w_arr = jnp.transpose(w4, (1, 0, 2, 3)).reshape(num_ct, 4 * c_tile, Cin)
    w_arr = w_arr.astype(compute_dtype)

    # Grid-axis order: keep x resident across channel tiles unless re-fetching the
    # full weight tensor N times costs more HBM traffic than re-fetching x num_ct times.
    x_total = N * Cin * HW * jnp.dtype(x_in.dtype).itemsize
    w_total = 4 * cout_p * Cin * w_item
    batch_major = (N - 1) * w_total <= (num_ct - 1) * x_total

    if batch_major:
        grid = (N, num_ct)
        x_map = lambda n, ct: (n, 0, 0)
        w_map = lambda n, ct: (ct, 0, 0)
        o_map = lambda n, ct: (n, ct, 0, 0, 0)
    else:
        grid = (num_ct, N)
        x_map = lambda ct, n: (n, 0, 0)
        w_map = lambda ct, n: (ct, 0, 0)
        o_map = lambda ct, n: (n, ct, 0, 0, 0)

    if pack_pairs:
        out_shape = jax.ShapeDtypeStruct((N, num_ct, 2, c_tile, HW), jnp.uint32)
        o_spec = pl.BlockSpec((pl.Squeezed(), pl.Squeezed(), 2, c_tile, HW), o_map)
    else:
        out_shape = jax.ShapeDtypeStruct((N, num_ct, 4, c_tile, HW), jnp.float32)
        o_spec = pl.BlockSpec((pl.Squeezed(), pl.Squeezed(), 4, c_tile, HW), o_map)

    est = _vmem_estimate(c_tile, Cin, HW, w_item, o_item)
    cp_kwargs = dict(dimension_semantics=("parallel", "parallel"))
    if est > 14 * 1024 * 1024:  # may exceed the smallest scoped default (v5e: 16 MiB)
        cap = 48 * 1024 * 1024  # conservative fallback: never all of v7x's 64 MiB
        try:
            cap = max(cap, min(int(0.75 * pltpu.get_tpu_info().vmem_capacity_bytes),
                               100 * 1024 * 1024))
        except Exception:
            pass
        cp_kwargs["vmem_limit_bytes"] = int(min(max(est * 5 // 4, 16 * 1024 * 1024), cap))

    kernel = functools.partial(_tconv_in_lrelu_kernel, pack_pairs=pack_pairs)
    out = pl.pallas_call(
        kernel,
        out_shape=out_shape,
        grid_spec=pltpu.PrefetchScalarGridSpec(
            num_scalar_prefetch=0,
            grid=grid,
            in_specs=[
                pl.BlockSpec((pl.Squeezed(), Cin, HW), x_map),
                pl.BlockSpec((pl.Squeezed(), 4 * c_tile, Cin), w_map),
            ],
            out_specs=o_spec,
        ),
        compiler_params=pltpu.CompilerParams(**cp_kwargs),
    )(x_in, w_arr)

    if pack_pairs:
        # The packed u32 block, reinterpreted as bf16, is already kw-interleaved
        # (u32 lane j = pixels (h, 2w) and (h, 2w+1)).  The only relayout left is
        # moving the kh axis next to h -- a bf16 transpose with a 2W-wide minor dim.
        y = out.view(jnp.bfloat16)                           # (N, num_ct, 2, c_tile, 2*HW)
        y = y.reshape(N, num_ct, 2, c_tile, H, 2 * W)
        y = jnp.transpose(y, (0, 1, 3, 4, 2, 5))             # (n, ct, cl, h, kh, 2w+kw)
        y = y.reshape(N, cout_p, 2 * H, 2 * W)
    else:
        y = out.reshape(N, num_ct, 2, 2, c_tile, H, W)       # (n, ct, kh, kw, cl, h, w)
        y = jnp.transpose(y, (0, 1, 4, 5, 2, 6, 3))          # (n, ct, cl, h, kh, w, kw)
        y = y.reshape(N, cout_p, 2 * H, 2 * W)

    if cout_p != Cout:
        y = y[:, :Cout]
    return y.astype(out_dtype)


def _reference(x_nchw, weight):
    # Pure-JAX f32 reference of the PyTorch forward pass.
    N, Cin, H, W = x_nchw.shape
    Cout = weight.shape[1]
    y = jnp.einsum("nihw,iokl->nohwkl", x_nchw, weight,
                   precision=jax.lax.Precision.HIGHEST)       # (N, Co, H, W, 2, 2)
    y = jnp.transpose(y, (0, 1, 2, 4, 3, 5)).reshape(N, Cout, 2 * H, 2 * W)
    mean = jnp.mean(y, axis=(2, 3), keepdims=True)
    var = jnp.var(y, axis=(2, 3), keepdims=True)
    yn = (y - mean) / jnp.sqrt(var + EPS)
    return jnp.where(yn >= 0, yn, NEG_SLOPE * yn)


if __name__ == "__main__":
    key = jax.random.PRNGKey(0)
    kx, kw = jax.random.split(key)

    N, in_chans, out_chans, H, W = 2, 4, 8, 16, 16
    x = jax.random.normal(kx, (N, in_chans, H, W), dtype=jnp.float32)
    # ConvTranspose2d weight shape: (in_chans, out_chans, kH, kW)
    weight = jax.random.normal(kw, (in_chans, out_chans, 2, 2), dtype=jnp.float32) * 0.1

    ref = _reference(x, weight)

    # f32-operand path (unpacked f32 output): tight check of the fused-kernel semantics.
    out_f32 = jax.block_until_ready(
        transpose_conv_block(x, weight, compute_dtype=jnp.float32))
    assert out_f32.shape == (N, out_chans, 2 * H, 2 * W)
    err_f32 = float(jnp.max(jnp.abs(out_f32 - ref)))
    assert err_f32 < 5e-4, err_f32

    # Default bf16 path (bf16 operands + packed bf16 output): relaxed tolerance
    # (operand quantization + bf16 output quantization).
    out_bf16 = jax.block_until_ready(transpose_conv_block(x, weight))
    assert out_bf16.shape == (N, out_chans, 2 * H, 2 * W)
    assert out_bf16.dtype == x.dtype
    err_bf16 = float(jnp.max(jnp.abs(out_bf16 - ref)))
    assert err_bf16 < 1e-1, err_bf16

    print("KERNEL_OK")
</pallas_src>

<mosaic_0001>
module attributes {stable_mosaic.version = 11 : i64} {
  func.func @_tconv_in_lrelu_kernel(%arg0: i32, %arg1: i32, %arg2: memref<1x4x256xf32, #tpu.memory_space<vmem>>, %arg3: memref<1x32x4xf32, #tpu.memory_space<vmem>>, %arg4: memref<1x1x4x8x256xf32, #tpu.memory_space<vmem>>) attributes {dimension_semantics = [#tpu.dimension_semantics<parallel>, #tpu.dimension_semantics<parallel>], iteration_bounds = array<i64: 1, 2>, scalar_prefetch = 0 : i64, scratch_operands = 0 : i64, tpu.core_type = #tpu.core_type<tc>, window_params = [{transform_indices = @transform_0, window_bounds = array<i64: 1, 4, 256>}, {transform_indices = @transform_1, window_bounds = array<i64: 1, 32, 4>}, {transform_indices = @transform_2, window_bounds = array<i64: 1, 1, 4, 8, 256>}]} {
    %c0 = arith.constant 0 : index
    %c0_0 = arith.constant 0 : index
    %c0_1 = arith.constant 0 : index
    %0 = vector.load %arg2[%c0, %c0_0, %c0_1] : memref<1x4x256xf32, #tpu.memory_space<vmem>>, vector<1x4x256xf32>
    %1 = vector.shape_cast %0 : vector<1x4x256xf32> to vector<4x256xf32>
    %c0_2 = arith.constant 0 : index
    %c0_3 = arith.constant 0 : index
    %c0_4 = arith.constant 0 : index
    %2 = vector.load %arg3[%c0_2, %c0_3, %c0_4] : memref<1x32x4xf32, #tpu.memory_space<vmem>>, vector<1x32x4xf32>
    %3 = vector.shape_cast %2 : vector<1x32x4xf32> to vector<32x4xf32>
    %cst = arith.constant dense<0.000000e+00> : vector<32x256xf32>
    %4 = tpu.matmul %3, %1, %cst {dimension_numbers = #tpu.dot_dimension_numbers<[1], [0], [0], [1], [0, 0, 1, 1], [], []>} : vector<32x4xf32>, vector<4x256xf32>, vector<32x256xf32> -> vector<32x256xf32>
    %5 = vector.shape_cast %4 : vector<32x256xf32> to vector<4x8x256xf32>
    %cst_5 = arith.constant dense<0.000000e+00> : vector<4xf32>
    %6 = vector.multi_reduction <add>, %1, %cst_5 [1] : vector<4x256xf32> to vector<4xf32>
    %7 = vector.shape_cast %6 : vector<4xf32> to vector<4x1xf32>
    %8 = vector.shape_cast %7 : vector<4x1xf32> to vector<1x4xf32>
    %9 = vector.broadcast %8 : vector<1x4xf32> to vector<32x4xf32>
    %10 = arith.mulf %3, %9 : vector<32x4xf32>
    %cst_6 = arith.constant dense<0.000000e+00> : vector<32xf32>
    %11 = vector.multi_reduction <add>, %10, %cst_6 [1] : vector<32x4xf32> to vector<32xf32>
    %12 = vector.shape_cast %11 : vector<32xf32> to vector<32x1xf32>
    %13 = vector.shape_cast %12 : vector<32x1xf32> to vector<4x8x1xf32>
    %cst_7 = arith.constant dense<0.000000e+00> : vector<8x1xf32>
    %14 = vector.multi_reduction <add>, %13, %cst_7 [0] : vector<4x8x1xf32> to vector<8x1xf32>
    %15 = vector.shape_cast %14 : vector<8x1xf32> to vector<1x8x1xf32>
    %cst_8 = arith.constant 9.765625E-4 : f32
    %16 = vector.broadcast %cst_8 : f32 to vector<1x8x1xf32>
    %17 = arith.mulf %15, %16 : vector<1x8x1xf32>
    %18 = vector.broadcast %17 : vector<1x8x1xf32> to vector<4x8x256xf32>
    %19 = arith.subf %5, %18 : vector<4x8x256xf32>
    %20 = arith.mulf %19, %19 : vector<4x8x256xf32>
    %cst_9 = arith.constant dense<0.000000e+00> : vector<4x8xf32>
    %21 = vector.multi_reduction <add>, %20, %cst_9 [2] : vector<4x8x256xf32> to vector<4x8xf32>
    %22 = vector.shape_cast %21 : vector<4x8xf32> to vector<4x8x1xf32>
    %cst_10 = arith.constant dense<0.000000e+00> : vector<8x1xf32>
    %23 = vector.multi_reduction <add>, %22, %cst_10 [0] : vector<4x8x1xf32> to vector<8x1xf32>
    %24 = vector.shape_cast %23 : vector<8x1xf32> to vector<1x8x1xf32>
    %cst_11 = arith.constant 9.765625E-4 : f32
    %25 = vector.broadcast %cst_11 : f32 to vector<1x8x1xf32>
    %26 = arith.mulf %24, %25 : vector<1x8x1xf32>
    %cst_12 = arith.constant 9.99999974E-6 : f32
    %27 = vector.broadcast %cst_12 : f32 to vector<1x8x1xf32>
    %28 = arith.addf %26, %27 : vector<1x8x1xf32>
    %29 = math.rsqrt %28 : vector<1x8x1xf32>
    %30 = vector.broadcast %29 : vector<1x8x1xf32> to vector<4x8x256xf32>
    %31 = arith.mulf %19, %30 : vector<4x8x256xf32>
    %cst_13 = arith.constant 0.000000e+00 : f32
    %32 = vector.broadcast %cst_13 : f32 to vector<4x8x256xf32>
    %33 = arith.cmpf oge, %31, %32 : vector<4x8x256xf32>
    %cst_14 = arith.constant 2.000000e-01 : f32
    %34 = vector.broadcast %cst_14 : f32 to vector<4x8x256xf32>
    %35 = arith.mulf %34, %31 : vector<4x8x256xf32>
    %36 = arith.select %33, %31, %35 : vector<4x8x256xi1>, vector<4x8x256xf32>
    %c0_15 = arith.constant 0 : index
    %c0_16 = arith.constant 0 : index
    %c0_17 = arith.constant 0 : index
    %c0_18 = arith.constant 0 : index
    %c0_19 = arith.constant 0 : index
    %37 = vector.load %arg4[%c0_15, %c0_16, %c0_17, %c0_18, %c0_19] : memref<1x1x4x8x256xf32, #tpu.memory_space<vmem>>, vector<1x1x4x8x256xf32>
    %38 = vector.shape_cast %37 : vector<1x1x4x8x256xf32> to vector<4x8x256xf32>
    %39 = vector.shape_cast %36 : vector<4x8x256xf32> to vector<1x1x4x8x256xf32>
    tpu.vector_store %arg4[%c0_15, %c0_16, %c0_17, %c0_18, %c0_19], %39 {strides = array<i32>} : memref<1x1x4x8x256xf32, #tpu.memory_space<vmem>>, vector<1x1x4x8x256xf32>,
    return
  }
  func.func @transform_0(%arg0: i32, %arg1: i32) -> (i32, i32, i32) {
    %c0_i32 = arith.constant 0 : i32
    %c0_i32_0 = arith.constant 0 : i32
    %c0_i32_1 = arith.constant 0 : i32
    return %arg1, %c0_i32, %c0_i32_0 : i32, i32, i32
  }
  func.func @transform_1(%arg0: i32, %arg1: i32) -> (i32, i32, i32) {
    %c0_i32 = arith.constant 0 : i32
    %c0_i32_0 = arith.constant 0 : i32
    %c0_i32_1 = arith.constant 0 : i32
    return %arg0, %c0_i32, %c0_i32_0 : i32, i32, i32
  }
  func.func @transform_2(%arg0: i32, %arg1: i32) -> (i32, i32, i32, i32, i32) {
    %c0_i32 = arith.constant 0 : i32
    %c0_i32_0 = arith.constant 0 : i32
    %c0_i32_1 = arith.constant 0 : i32
    %c0_i32_2 = arith.constant 0 : i32
    return %arg1, %arg0, %c0_i32, %c0_i32_0, %c0_i32_1 : i32, i32, i32, i32, i32
  }
}

</mosaic_0001>

<bundles_post_ra>
// kernel: tpu_custom_call.1
= control target key start
LH: loop header
LB: loop body
LE: loop exit
PB: predicated region body
PF: predicated region fallthrough
CT: control target
= control target key end

     0   :  { %7 = vsyncpa [#allocation3], 0  ;;  %s845_s0 = inlined_call_operand.vmem [shape: f32[2,4,256], index: 0, kind: input, shape index: {}]   ;;  %s846_s1 = inlined_call_operand.vmem [shape: f32[1,32,4], index: 1, kind: input, shape index: {}]   ;;  %s847_s2 = inlined_call_operand.hbm [shape: f32[2,1,4,8,256], index: 2, kind: output, shape index: {}]  }
   0x1   :  { %9 = vsyncpa [#allocation3 + $0x1], 0  ;;  %s698_s9 = smov 0   ;;  %s700_s10 = smov 0  }
   0x2   :  { %s702_s11 = smov 0   ;;  %s704_s12 = smov 0  }
   0x3   :  { %s706_s13 = smov 0   ;;  %s708_s14 = smov 0  }
   0x4 LB: > { %s514_s15 = sadd.s32 4294967295, %s677_s14   ;;  %s515_s16 = sadd.s32 4294967294, %s677_s14   ;;  %s677_s14 = sphi %s708_s14, %s15_s14   ;;  %s673_s13 = sphi %s706_s13, %s854_s13   ;;  %s669_s12 = sphi %s704_s12, %s853_s12   ;;  %s665_s11 = sphi %s702_s11, %s852_s11   ;;  %s661_s10 = sphi %s700_s10, %s851_s10   ;;  %s657_s9 = sphi %s698_s9, %s850_s9  }
   0x5   : > { %s24_s17 = sadd.s32 1, %s673_s13  ;;  %s88_s18 = sadd.s32 1, %s665_s11 }
   0x6   : > { %p25_p0 = scmp.ge.s32.totalorder %s24_s17, 2  ;;  %p98_p1 = scmp.ne.s32.totalorder %s665_s11, %s661_s10 }
   0x7   : > { %p99_p2 = scmp.eq.s32.totalorder %s514_s15, 1  ;;  %p104_p3 = scmp.ne.s32.totalorder %s661_s10, %s657_s9 }
   0x8   : > { %s856_s17 = smov (%p25_p0, %s24_s17), 0  ;;  %p105_p5 = scmp.eq.s32.totalorder %s515_s16, 1 }
   0x9   : > { %p738_p4 = por %p99_p2, %p98_p1  ;;  %s83_s20 = ssub.s32 %s673_s13, %s856_s17 }
   0xa   : > { %p519_p6 = scmp.ge.s32.totalorder %s677_s14, 1  ;;  %p86_p7 = scmp.eq.s32.totalorder %s83_s20, 0 }
   0xb   : > { %p745_p8 = por %p105_p5, %p104_p3  ;;  %p139_p9 = scmp.lt.s32.totalorder %s677_s14, 3 }
   0xc   : > { %s751_s22 = scalar_select %p86_p7, %s665_s11, %s88_s18  }
   0xd   : > { %p140_p10 = pnand %p519_p6, %p139_p9 }
   0xe   : > { %p166_p11 = scmp.lt.s32.totalorder (!%p140_p10), %s669_s12, 1  ;;  %v679_v0 = vmov (!%p140_p10), 0.0   ;;  %vm196_vm0 = vcmask (!%p140_p10), 1043456   ;;  %v177_v4 = vld [vmem:[%s846_s1] sm:$0xff] (!%p140_p10)  ;;  %vm183_vm1 = vcmask (!%p140_p10), 31744   ;;  %v179_v5 = vld [vmem:[%s846_s1 + $0x10] sm:$0xff] (!%p140_p10)  ;;  %v297_v10 = vlaneseq (!%p140_p10) }
   0xf   : > { %143 = sbr.rel (%p140_p10) target bundleno = 528 (0x210), region = 28  ;;  %265 = vmatprep.mubr.f32.mxu0 (!%p140_p10), %v679_v0  ;;  %277 = vmatprep.mubr.f32.mxu1 (!%p140_p10), %v679_v0  ;;  %v178_v8 = vld [vmem:[%s846_s1 + $0x8] sm:$0xff] (!%p140_p10)  ;;  %v180_v9 = vld [vmem:[%s846_s1 + $0x18] sm:$0xff] (!%p140_p10)  ;;  %s163_s8 = sand.u32 (!%p140_p10), 1, %s661_s10  }
  0x10   : > { %v298_v11 = vand.u32 (!%p140_p10), 127, %v297_v10  ;;  %v300_v12 = vshrl.u32 (!%p140_p10), %v297_v10, 7  ;;  %s520_s15 = sshll.u32 (!%p140_p10), %s163_s8, 6  ;;  %s535_s16 = sshll.u32 (!%p140_p10), %s669_s12, 10 }
  0x11   : > { %s165_s18 = scalar_lea.vmem (!%p140_p10), [#allocation2], %s520_s15  ;;  %s799_s25 = scalar_lea.sflag (!%p140_p10), [#allocation3], %s163_s8 }
  0x12   : > { %v301_v13 = vsub.s32 (!%p140_p10), %v298_v11, %v300_v12  ;;  %s426_s20 = sshll.u32 (!%p140_p10), %s165_s18, 4  ;;  %s789_s20 = int_to_ptr.vmem [resolvable:$true] %s426_s20 }
  0x13   : > { %s599_s26 = scalar_lea.vmem (!%p140_p10), %s789_s20, 1024 }
  0x14   : > { %p600_p12 = scmp.ne.s32.totalorder (!%p140_p10), %s789_s20, %s599_s26 }
  0x16   : > { %s167_s23 = scalar_select %p166_p11, %s669_s12, 1 }
  0x17   : > { %p601_p13 = pnand %p600_p12, %p738_p4 }
  0x18   : > { %s534_s24 = sshll.u32 %s167_s23, 3 }
  0x19   : > { %s170_s27 = scalar_lea.vmem %s845_s0, %s534_s24  ;;  %s787_s24 = scalar_lea.hbm %s847_s2, %s535_s16 }
  0x1a   : > { %v176_v1 = vld [vmem:[%s170_s27] sm:$0xff]  ;;  %p602_p0 = pneg %p601_p13  ;;  %s680_s27 = smov [#allocation2]  }
  0x1b   : > { %v182_v2 = vcombine.high %v176_v1, %v176_v1  ;;  %v291_v3 = vsel %vm196_vm0, %v176_v1, 0.0  ;;  %s603_s28 = sshll.u32 %s680_s27, 4  ;;  %s604_s28 = int_to_ptr.vmem [resolvable:$false] %s603_s28 }
  0x1c   : > { %s605_s29 = scalar_lea.vmem %s604_s28, 2048  ;;  %p606_p1 = scmp.lt.s32.totalorder %s789_s20, %s604_s28 }
  0x1d   : > { %v292_v6 = vsel %vm196_vm0, %v182_v2, 0.0  ;;  %523 = vmatprep.subr.msk.mxu0 %vm196_vm0, %v182_v2  ;;  %536 = vmatprep.subr.msk.mxu1 %vm196_vm0, %v182_v2  ;;  %p607_p2 = scmp.lt.s32.totalorder %s605_s29, %s599_s26 }
  0x1e   : > { %v293_v7 = vadd.f32 %v292_v6, %v291_v3  ;;  %524 = vmatpush1.msk.msra.mxu0 %vm196_vm0, %v176_v1  ;;  %537 = vmatpush1.msk.msra.mxu1 %vm196_vm0, %v176_v1 }
  0x1f   : > { %525 = vmatmul.mubr.msk.f32.vlgmr.msra.gmra.mrb[0].mxu0 %vm183_vm1, %v177_v4  ;;  %527 = vmatmul.mubr.msk.f32.vlgmr.msra.gmra.mrb[0].mxu1 %vm183_vm1, %v179_v5  ;;  %p608_p3 = por %p607_p2, %p606_p1 }
  0x20   : > { %294 = vadd.xlane.f32.xlu0 %v293_v7  ;;  %271 = vmatprep.mubr.f32.mxu0 %v679_v0 }
  0x21   : > { %283 = vmatprep.mubr.f32.mxu1 %v679_v0  ;;  %p609_p5 = pnand %p608_p3, %p602_p0 }
  0x23   : > { %526 = vmatmul.mubr.msk.f32.gmra.mrb[2].mxu0 %vm183_vm1, %v178_v8  ;;  %528 = vmatmul.mubr.msk.f32.gmra.mrb[2].mxu1 %vm183_vm1, %v180_v9 }
  0xad   : > { %v295_v14 = vpop.xlane.xlu0 %294 }
  0xae   : > { %v302_v15 = vrot.slane %v295_v14, %v301_v13 }
  0xb0   : > { %v317_v16 = vmul.f32 %v302_v15, %v178_v8  ;;  %v316_v17 = vmul.f32 %v302_v15, %v177_v4  ;;  %v318_v20 = vmul.f32 %v302_v15, %v179_v5  ;;  %v319_v21 = vmul.f32 %v302_v15, %v180_v9 }
  0xb2   : > { %v323_v18 = vsel %vm183_vm1, %v317_v16, 0.0  ;;  %v320_v19 = vsel %vm183_vm1, %v316_v17, 0.0  ;;  %v326_v22 = vsel %vm183_vm1, %v318_v20, 0.0  ;;  %v329_v23 = vsel %vm183_vm1, %v319_v21, 0.0 }
  0xb3   : > { %324 = vadd.xlane.f32.xlu1 %v323_v18  ;;  %321 = vadd.xlane.f32.xlu0 %v320_v19 }
  0xb7   : > { %327 = vadd.xlane.f32.xlu1 %v326_v22  ;;  %330 = vadd.xlane.f32.xlu0 %v329_v23 }
  0xf2   : > { %v267_v24 = vpop.f32.mrb[0].mxu0  ;;  %v279_v25 = vpop.f32.mrb[0].mxu1 }
  0xf3   : > { %v269_v26 = vpop.f32.mrb[1].mxu0  ;;  %v281_v27 = vpop.f32.mrb[1].mxu1 }
  0xf6   : > { %v273_v28 = vpop.f32.mrb[2].mxu0  ;;  %v285_v29 = vpop.f32.mrb[2].mxu1 }
  0xf7   : > { %v275_v30 = vpop.f32.mrb[3].mxu0  ;;  %v287_v31 = vpop.f32.mrb[3].mxu1 }
 0x140   : > { %v325_v32 = vpop.xlane.xlu1 %324  ;;  %v322_v33 = vpop.xlane.xlu0 %321 }
 0x141   : > { %v332_v34 = vadd.f32 %v325_v32, %v322_v33 }
 0x144   : > { %v328_v35 = vpop.xlane.xlu1 %327  ;;  %v331_v37 = vpop.xlane.xlu0 %330 }
 0x145   : > { %v333_v36 = vadd.f32 %v332_v34, %v328_v35 }
 0x147   : > { %v334_v38 = vadd.f32 %v333_v36, %v331_v37 }
 0x149   : > { %v335_v39 = vmul.f32 0.0009765625, %v334_v38 }
 0x14b   : > { %v336_v40 = vsub.f32 %v267_v24, %v335_v39  ;;  %v337_v41 = vsub.f32 %v269_v26, %v335_v39  ;;  %v340_v42 = vsub.f32 %v279_v25, %v335_v39  ;;  %v341_v43 = vsub.f32 %v281_v27, %v335_v39 }
 0x14c   : > { %v338_v44 = vsub.f32 %v273_v28, %v335_v39  ;;  %v342_v45 = vsub.f32 %v285_v29, %v335_v39  ;;  %v339_v46 = vsub.f32 %v275_v30, %v335_v39  ;;  %v343_v47 = vsub.f32 %v287_v31, %v335_v39 }
 0x14d   : > { %v344_v48 = vmul.f32 %v336_v40, %v336_v40  ;;  %v345_v49 = vmul.f32 %v337_v41, %v337_v41  ;;  %v348_v52 = vmul.f32 %v340_v42, %v340_v42  ;;  %v349_v53 = vmul.f32 %v341_v43, %v341_v43 }
 0x14e   : > { %v346_v50 = vmul.f32 %v338_v44, %v338_v44  ;;  %v347_v51 = vmul.f32 %v339_v46, %v339_v46  ;;  %v350_v55 = vmul.f32 %v342_v45, %v342_v45  ;;  %v351_v56 = vmul.f32 %v343_v47, %v343_v47 }
 0x14f   : > { %v352_v54 = vadd.f32 %v345_v49, %v344_v48  ;;  %v358_v58 = vadd.f32 %v349_v53, %v348_v52 }
 0x150   : > { %v355_v57 = vadd.f32 %v347_v51, %v346_v50  ;;  %v361_v59 = vadd.f32 %v351_v56, %v350_v55 }
 0x151   : > { %353 = vadd.xlane.f32.xlu1 %v352_v54 }
 0x152   : > { %356 = vadd.xlane.f32.xlu0 %v355_v57 }
 0x155   : > { %359 = vadd.xlane.f32.xlu1 %v358_v58 }
 0x156   : > { %362 = vadd.xlane.f32.xlu0 %v361_v59 }
 0x1de   : > { %v354_v60 = vpop.xlane.xlu1 %353 }
 0x1df   : > { %v357_v61 = vpop.xlane.xlu0 %356 }
 0x1e0   : > { %v364_v62 = vadd.f32 %v357_v61, %v354_v60 }
 0x1e2   : > { %v360_v63 = vpop.xlane.xlu1 %359 }
 0x1e3   : > { %v365_v0 = vadd.f32 %v364_v62, %v360_v63  ;;  %v363_v1 = vpop.xlane.xlu0 %362 }
 0x1e5   : > { %v366_v2 = vadd.f32 %v365_v0, %v363_v1 }
 0x1e7   : > { %v367_v3 = vmul.f32 0.0009765625, %v366_v2 }
 0x1e9   : > { %v368_v4 = vadd.f32 1e-05, %v367_v3 }
 0x1eb   : > { %597 = vrsqrt.f32 %v368_v4 }
 0x1f5   : > { %v598_v5 = vpop.eup %597 }
 0x1f6   : > { %v370_v6 = vmul.f32 %v598_v5, %v336_v40  ;;  %v371_v7 = vmul.f32 %v598_v5, %v337_v41  ;;  %v372_v8 = vmul.f32 %v598_v5, %v338_v44  ;;  %v373_v9 = vmul.f32 %v598_v5, %v339_v46 }
 0x1f7   : > { %v374_v10 = vmul.f32 %v598_v5, %v340_v42  ;;  %v375_v11 = vmul.f32 %v598_v5, %v341_v43  ;;  %v376_v12 = vmul.f32 %v598_v5, %v342_v45  ;;  %v377_v13 = vmul.f32 %v598_v5, %v343_v47 }
 0x1f8   : > { %vm378_vm2 = vcmp.ge.f32.partialorder %v370_v6, 0.0  ;;  %vm379_vm3 = vcmp.ge.f32.partialorder %v371_v7, 0.0  ;;  %vm380_vm4 = vcmp.ge.f32.partialorder %v372_v8, 0.0  ;;  %vm381_vm5 = vcmp.ge.f32.partialorder %v373_v9, 0.0 }
 0x1f9   : > { %vm382_vm6 = vcmp.ge.f32.partialorder %v374_v10, 0.0  ;;  %vm383_vm7 = vcmp.ge.f32.partialorder %v375_v11, 0.0  ;;  %vm384_vm8 = vcmp.ge.f32.partialorder %v376_v12, 0.0  ;;  %vm385_vm9 = vcmp.ge.f32.partialorder %v377_v13, 0.0 }
 0x1fa   : > { %v386_v14 = vmul.f32 0.2, %v370_v6  ;;  %v387_v15 = vmul.f32 0.2, %v371_v7  ;;  %v388_v16 = vmul.f32 0.2, %v372_v8 }
 0x1fb   : > { %v389_v17 = vmul.f32 0.2, %v373_v9  ;;  %v390_v18 = vmul.f32 0.2, %v374_v10  ;;  %v391_v19 = vmul.f32 0.2, %v375_v11 }
 0x1fc   : > { %v392_v20 = vmul.f32 0.2, %v376_v12  ;;  %v393_v21 = vmul.f32 0.2, %v377_v13  ;;  %v394_v22 = vsel %vm378_vm2, %v370_v6, %v386_v14  ;;  %v395_v23 = vsel %vm379_vm3, %v371_v7, %v387_v15 }
 0x1fd   : > { %v396_v24 = vsel %vm380_vm4, %v372_v8, %v388_v16  ;;  %v397_v25 = vsel %vm381_vm5, %v373_v9, %v389_v17  ;;  %v398_v26 = vsel %vm382_vm6, %v374_v10, %v390_v18  ;;  %v399_v27 = vsel %vm383_vm7, %v375_v11, %v391_v19  ;;  %402 = vst [vmem:[%s165_s18] sm:$0xff] %v394_v22 }
 0x1fe   : > { %403 = vst [vmem:[%s165_s18 + $0x8] sm:$0xff] %v395_v23  ;;  %v400_v28 = vsel %vm384_vm8, %v376_v12, %v392_v20  ;;  %v401_v29 = vsel %vm385_vm9, %v377_v13, %v393_v21  ;;  %404 = vst [vmem:[%s165_s18 + $0x10] sm:$0xff] %v396_v24 }
 0x1ff   : > { %405 = vst [vmem:[%s165_s18 + $0x18] sm:$0xff] %v397_v25  ;;  %406 = vst [vmem:[%s165_s18 + $0x20] sm:$0xff] %v398_v26 }
 0x200   : > { %407 = vst [vmem:[%s165_s18 + $0x28] sm:$0xff] %v399_v27  ;;  %408 = vst [vmem:[%s165_s18 + $0x30] sm:$0xff] %v400_v28 }
 0x201   : > { %409 = vst [vmem:[%s165_s18 + $0x38] sm:$0xff] %v401_v29 }
 0x202   : > { %612 = shalt.err (!%p609_p5)
}
 0x203   : > { %s613_s30 = scalar_lea.hbm %s787_s24, 1024  ;;  %s617_s5 = scalar_lea.hbm %s847_s2, 2048 }
 0x204   : > { %p614_p6 = scmp.ne.s32.totalorder %s787_s24, %s613_s30  ;;  %p618_p10 = scmp.lt.u32.totalorder %s787_s24, %s847_s2 }
 0x205   : > { %p619_p11 = scmp.lt.u32.totalorder %s617_s5, %s613_s30  ;;  %p621_p13 = scmp.lt.u32.totalorder %s613_s30, %s787_s24 }
 0x206   : > { %p615_p7 = pnand %p614_p6, %p738_p4 }
 0x207   : > { %p620_p12 = por %p619_p11, %p618_p10 }
 0x208   : > { %p616_p9 = pneg %p615_p7 }
 0x209   : > { %p622_p0 = por %p621_p13, %p620_p12 }
 0x20b   : > { %p623_p1 = pnand %p622_p0, %p616_p9 }
 0x20d   : > { %626 = shalt.err (!%p623_p1)
}
 0x20e   : > { %s681_s8 = smov 256   ;;  %s682_s15 = smov 16  }
 0x20f   : > { %538 = dma.vmem_to_hbm [thread:$0]  (%p738_p4), %s789_s20, 1024, %s787_s24, %s799_s25, %s681_s8, %s681_s8, %s682_s15  }
 0x210 PF: > { %p544_p2 = scmp.ge.s32.totalorder %s677_s14, 2  ;;  %s441_s16 = sand.u32 1, %s657_s9  }
 0x211   : > { %s442_s18 = scalar_lea.sflag [#allocation3], %s441_s16 }
 0x212   : > { %p541_p3 = pnand %p544_p2, %p745_p8 }
 0x214   : > { %652 = dma.done.wait (!%p541_p3), %s442_s18, 1024  }
 0x215   : > { %654 = vsyncadd (!%p541_p3), %s442_s18, 4294966272  ;;  %s15_s14 = sadd.s32 1, %s677_s14   ;;  %s850_s9 = smov %s661_s10 }
 0x216   : > { %p12_p5 = scmp.ge.s32.totalorder %s15_s14, 4   ;;  %s851_s10 = smov %s665_s11 }
 0x217   : > { %s852_s11 = smov %s751_s22  ;;  %s853_s12 = smov %s673_s13 }
 0x218   : > { %s854_s13 = smov %s856_s17  ;;  %14 = sbr.rel (!%p12_p5) target bundleno = 4 (0x4), region = 66 }
 0x21f   :  { %447 = vsyncpa [#allocation3], 1 }
 0x220   :  { %449 = vsyncpa [#allocation3 + $0x1], 1 }

</bundles_post_ra>
